<compile_context>
chip_gen: v7x
topology: tpu7x:2x2x1
jax: 0.10.0
libtpu: 0.0.40
codegen_flags: <defaults>
</compile_context>

<pallas_src>
import jax
import jax.numpy as jnp
from jax.experimental import pallas as pl
from jax.experimental.pallas import tpu as pltpu


def _make_kernel(add_bias: bool):
    """Build the kernel; bias add is resolved at trace time (bit-exact copy
    for the stdbias=None path)."""
    if add_bias:
        def kernel(bias_ref, x_ref, o_ref):
            # x_ref / o_ref: VMEM (half, T_HW); batch & split dims squeezed.
            s = pl.program_id(1)  # 0 -> mu, 1 -> pre_sigma

            @pl.when(s == 0)
            def _():
                o_ref[...] = x_ref[...]

            @pl.when(s == 1)
            def _():
                # cast bias to the output dtype so bf16/f16 inputs lower cleanly
                o_ref[...] = x_ref[...] + bias_ref[0].astype(o_ref.dtype)
    else:
        def kernel(bias_ref, x_ref, o_ref):  # bias_ref unused; pure copy
            o_ref[...] = x_ref[...]
    return kernel


def _round_up(a, b):
    return (a + b - 1) // b * b


def _choose_hw_tile(hw, half, dtype_bytes):
    """Pick a lane tile T_HW (multiple of 128) and the padded HW extent."""
    LANE = 128
    # Live VMEM per step: (input tile + output tile) x 2 pipeline buffers.
    # Keep 4 * half * T_HW * dtype_bytes under ~8 MiB: comfortable on every
    # generation, including v7x's 64 MiB physical / 32 MiB scoped default.
    budget = 8 * 1024 * 1024
    cap = max(LANE, (budget // (4 * half * dtype_bytes)) // LANE * LANE)
    cap = min(cap, 4096)
    hw128 = _round_up(hw, LANE)
    if hw128 <= cap:
        return hw128, hw128                 # one lane-dense tile covers HW
    if hw % LANE == 0:
        # Prefer a tile that divides HW exactly (no padding) but stays
        # >= 512 lanes so per-step DMA overhead is amortized.
        for k in range(cap // LANE, 3, -1):
            if (hw // LANE) % k == 0:
                return k * LANE, hw
    t = cap
    return t, _round_up(hw, t)


def mvsplit(logits, stdbias=None):
    """Pallas equivalent of MVSplit.forward.

    logits: (N, C, H, W), C must be even.
    stdbias: optional python float / 0-d array (the learnable scalar param).
    Returns (N, 2, C//2, H, W).
    """
    N, C, H, W = logits.shape
    assert C % 2 == 0, "channel dim must be even for MVSplit"
    half = C // 2
    HW = H * W
    dtype_bytes = jnp.dtype(logits.dtype).itemsize

    # Contiguous reshape == torch.chunk(dim=1) + torch.stack(dim=1).
    x = logits.reshape(N, 2, half, HW)

    T_HW, HW_pad = _choose_hw_tile(HW, half, dtype_bytes)
    if HW_pad != HW:
        x = jnp.pad(x, ((0, 0), (0, 0), (0, 0), (0, HW_pad - HW)))
    num_hw_tiles = HW_pad // T_HW

    add_bias = stdbias is not None
    if add_bias:
        bias_val = jnp.asarray(stdbias, jnp.float32).reshape(1)
    else:
        bias_val = jnp.zeros((1,), jnp.float32)

    # Size-1 batch/split dims are squeezed: kernel refs are plain (half, T_HW).
    blk = (pl.Squeezed(), pl.Squeezed(), half, T_HW)
    idx = lambda n, s, h: (n, s, 0, h)

    bytes_accessed = 2 * N * 2 * half * HW_pad * dtype_bytes  # read + write

    out = pl.pallas_call(
        _make_kernel(add_bias),
        out_shape=jax.ShapeDtypeStruct((N, 2, half, HW_pad), logits.dtype),
        grid_spec=pltpu.PrefetchScalarGridSpec(
            num_scalar_prefetch=0,
            grid=(N, 2, num_hw_tiles),
            in_specs=[
                pl.BlockSpec(memory_space=pltpu.MemorySpace.SMEM),  # bias scalar
                pl.BlockSpec(blk, idx),
            ],
            out_specs=pl.BlockSpec(blk, idx),
        ),
        compiler_params=pltpu.CompilerParams(
            dimension_semantics=("parallel", "parallel", "parallel")),
        cost_estimate=pl.CostEstimate(
            flops=0, transcendentals=0, bytes_accessed=int(bytes_accessed)),
    )(bias_val, x)

    if HW_pad != HW:
        out = out[..., :HW]
    return out.reshape(N, 2, half, H, W)


def _reference(logits, stdbias=None):
    C = logits.shape[1]
    mu, pre_sigma = logits[:, : C // 2], logits[:, C // 2:]
    if stdbias is not None:
        pre_sigma = pre_sigma + jnp.float32(stdbias)
    return jnp.stack([mu, pre_sigma], axis=1)


if __name__ == "__main__":
    key = jax.random.PRNGKey(0)

    # Primary test shape from the module spec.
    N, C, H, W = 2, 4, 16, 16
    x = jax.random.normal(key, (N, C, H, W), dtype=jnp.float32)
    stdbias = 0.5

    out = jax.block_until_ready(mvsplit(x, stdbias=stdbias))
    ref = _reference(x, stdbias=stdbias)
    assert out.shape == (N, 2, C // 2, H, W)
    assert jnp.allclose(out, ref, atol=1e-6), "mismatch with stdbias"

    out_none = jax.block_until_ready(mvsplit(x, stdbias=None))
    ref_none = _reference(x, stdbias=None)
    assert jnp.allclose(out_none, ref_none, atol=1e-6), "mismatch without stdbias"

    # Extra small check exercising the non-128-aligned HW padding path.
    x2 = jax.random.normal(jax.random.PRNGKey(1), (2, 6, 10, 10), jnp.float32)
    out2 = jax.block_until_ready(mvsplit(x2, stdbias=-0.25))
    ref2 = _reference(x2, stdbias=-0.25)
    assert out2.shape == (2, 2, 3, 10, 10)
    assert jnp.allclose(out2, ref2, atol=1e-6), "mismatch on padded-HW path"

    print("KERNEL_OK")
</pallas_src>

<mosaic_0001>
module attributes {stable_mosaic.version = 11 : i64} {
  func.func @kernel(%arg0: i32, %arg1: i32, %arg2: i32, %arg3: memref<1xf32, #tpu.memory_space<smem>>, %arg4: memref<1x1x2x256xf32, #tpu.memory_space<vmem>>, %arg5: memref<1x1x2x256xf32, #tpu.memory_space<vmem>>) attributes {dimension_semantics = [#tpu.dimension_semantics<parallel>, #tpu.dimension_semantics<parallel>, #tpu.dimension_semantics<parallel>], iteration_bounds = array<i64: 2, 2, 1>, scalar_prefetch = 0 : i64, scratch_operands = 0 : i64, tpu.core_type = #tpu.core_type<tc>, window_params = [{transform_indices = @transform_0, window_bounds = array<i64: 1>}, {transform_indices = @transform_1, window_bounds = array<i64: 1, 1, 2, 256>}, {transform_indices = @transform_2, window_bounds = array<i64: 1, 1, 2, 256>}]} {
    %c0_i32 = arith.constant 0 : i32
    %0 = arith.cmpi eq, %arg1, %c0_i32 : i32
    %1 = arith.extui %0 : i1 to i32
    %c0_i32_0 = arith.constant 0 : i32
    %2 = arith.cmpi ne, %1, %c0_i32_0 : i32
    scf.if %2 {
      %c0 = arith.constant 0 : index
      %c0_2 = arith.constant 0 : index
      %c0_3 = arith.constant 0 : index
      %c0_4 = arith.constant 0 : index
      %6 = vector.load %arg4[%c0, %c0_2, %c0_3, %c0_4] : memref<1x1x2x256xf32, #tpu.memory_space<vmem>>, vector<1x1x2x256xf32>
      %7 = vector.shape_cast %6 : vector<1x1x2x256xf32> to vector<2x256xf32>
      %c0_5 = arith.constant 0 : index
      %c0_6 = arith.constant 0 : index
      %c0_7 = arith.constant 0 : index
      %c0_8 = arith.constant 0 : index
      %8 = vector.load %arg5[%c0_5, %c0_6, %c0_7, %c0_8] : memref<1x1x2x256xf32, #tpu.memory_space<vmem>>, vector<1x1x2x256xf32>
      %9 = vector.shape_cast %8 : vector<1x1x2x256xf32> to vector<2x256xf32>
      %10 = vector.shape_cast %7 : vector<2x256xf32> to vector<1x1x2x256xf32>
      tpu.vector_store %arg5[%c0_5, %c0_6, %c0_7, %c0_8], %10 {strides = array<i32>} : memref<1x1x2x256xf32, #tpu.memory_space<vmem>>, vector<1x1x2x256xf32>,
    } else {
    }
    %c1_i32 = arith.constant 1 : i32
    %3 = arith.cmpi eq, %arg1, %c1_i32 : i32
    %4 = arith.extui %3 : i1 to i32
    %c0_i32_1 = arith.constant 0 : i32
    %5 = arith.cmpi ne, %4, %c0_i32_1 : i32
    scf.if %5 {
      %c0 = arith.constant 0 : index
      %c0_2 = arith.constant 0 : index
      %c0_3 = arith.constant 0 : index
      %c0_4 = arith.constant 0 : index
      %6 = vector.load %arg4[%c0, %c0_2, %c0_3, %c0_4] : memref<1x1x2x256xf32, #tpu.memory_space<vmem>>, vector<1x1x2x256xf32>
      %7 = vector.shape_cast %6 : vector<1x1x2x256xf32> to vector<2x256xf32>
      %c0_5 = arith.constant 0 : index
      %8 = memref.load %arg3[%c0_5] : memref<1xf32, #tpu.memory_space<smem>>
      %9 = vector.broadcast %8 : f32 to vector<2x256xf32>
      %10 = arith.addf %7, %9 : vector<2x256xf32>
      %c0_6 = arith.constant 0 : index
      %c0_7 = arith.constant 0 : index
      %c0_8 = arith.constant 0 : index
      %c0_9 = arith.constant 0 : index
      %11 = vector.load %arg5[%c0_6, %c0_7, %c0_8, %c0_9] : memref<1x1x2x256xf32, #tpu.memory_space<vmem>>, vector<1x1x2x256xf32>
      %12 = vector.shape_cast %11 : vector<1x1x2x256xf32> to vector<2x256xf32>
      %13 = vector.shape_cast %10 : vector<2x256xf32> to vector<1x1x2x256xf32>
      tpu.vector_store %arg5[%c0_6, %c0_7, %c0_8, %c0_9], %13 {strides = array<i32>} : memref<1x1x2x256xf32, #tpu.memory_space<vmem>>, vector<1x1x2x256xf32>,
    } else {
    }
    return
  }
  func.func @transform_0(%arg0: i32, %arg1: i32, %arg2: i32) -> i32 {
    %c0_i32 = arith.constant 0 : i32
    %c0_i32_0 = arith.constant 0 : i32
    return %c0_i32 : i32
  }
  func.func @transform_1(%arg0: i32, %arg1: i32, %arg2: i32) -> (i32, i32, i32, i32) {
    %c0_i32 = arith.constant 0 : i32
    %c0_i32_0 = arith.constant 0 : i32
    return %arg0, %arg1, %c0_i32, %arg2 : i32, i32, i32, i32
  }
  func.func @transform_2(%arg0: i32, %arg1: i32, %arg2: i32) -> (i32, i32, i32, i32) {
    %c0_i32 = arith.constant 0 : i32
    %c0_i32_0 = arith.constant 0 : i32
    return %arg0, %arg1, %c0_i32, %arg2 : i32, i32, i32, i32
  }
}

</mosaic_0001>

<bundles_post_ra>
// kernel: tpu_custom_call.1
= control target key start
LH: loop header
LB: loop body
LE: loop exit
PB: predicated region body
PF: predicated region fallthrough
CT: control target
= control target key end

     0   :  { %s758_s0 = inlined_call_operand.<no memory space> [shape: f32[1], index: 0, kind: input, shape index: {}]   ;;  %s759_s1 = inlined_call_operand.hbm [shape: f32[2,2,2,256], index: 1, kind: input, shape index: {}]   ;;  %s760_s2 = inlined_call_operand.hbm [shape: f32[2,2,2,256], index: 2, kind: output, shape index: {}]  }
   0x1   :  { %7 = sst [smem:[#allocation2]] %s758_s0 }
   0x2   :  { %8 = vsyncpa [#allocation4], 0 }
   0x3   :  { %10 = vsyncpa [#allocation4 + $0x1], 0 }
   0x4   :  { %11 = vsyncpa [#allocation5], 0 }
   0x5   :  { %13 = vsyncpa [#allocation5 + $0x1], 0  ;;  %s569_s11 = smov 0   ;;  %s571_s12 = smov 0  }
   0x6   :  { %s573_s13 = smov 0   ;;  %s575_s14 = smov 0  }
   0x7   :  { %s577_s15 = smov 0   ;;  %s579_s16 = smov 0  }
   0x8   :  { %s581_s17 = smov 0   ;;  %s583_s18 = smov 0  }
   0x9 LB: > { %s322_s0 = sadd.s32 4294967295, %s547_s18   ;;  %s323_s19 = sadd.s32 4294967294, %s547_s18   ;;  %s547_s18 = sphi %s583_s18, %s19_s18   ;;  %s543_s17 = sphi %s581_s17, %s777_s17   ;;  %s539_s16 = sphi %s579_s16, %s776_s16   ;;  %s535_s15 = sphi %s577_s15, %s775_s15   ;;  %s531_s14 = sphi %s575_s14, %s774_s14   ;;  %s527_s13 = sphi %s573_s13, %s773_s13   ;;  %s523_s12 = sphi %s571_s12, %s772_s12   ;;  %s519_s11 = sphi %s569_s11, %s771_s11  }
   0xa   : > { %s34_s20 = sadd.s32 1, %s539_s16  ;;  %s38_s21 = sadd.s32 1, %s543_s17 }
   0xb   : > { %p36_p0 = scmp.ge.s32.totalorder %s34_s20, 2  ;;  %s70_s22 = sadd.s32 1, %s527_s13 }
   0xc   : > { %p77_p1 = scmp.ne.s32.totalorder %s527_s13, %s523_s12  ;;  %p78_p2 = scmp.eq.s32.totalorder %s547_s18, 0 }
   0xd   : > { %s779_s20 = smov (%p36_p0, %s34_s20), 0  ;;  %s781_s21 = smov (!%p36_p0, %s38_s21), %s543_s17 }
   0xe   : > { %s64_s23 = ssub.s32 %s539_s16, %s779_s20  ;;  %p622_p3 = por %p78_p2, %p77_p1 }
   0xf   : > { %p40_p4 = scmp.ge.s32.totalorder %s781_s21, 2  ;;  %p83_p5 = scmp.ne.s32.totalorder %s523_s12, %s519_s11 }
  0x10   : > { %p84_p6 = scmp.eq.s32.totalorder %s322_s0, 0  ;;  %p111_p7 = scmp.eq.s32.totalorder %s322_s0, 3 }
  0x11   : > { %s783_s21 = smov (%p40_p4, %s781_s21), 0  ;;  %p117_p10 = scmp.eq.s32.totalorder %s323_s19, 3 }
  0x12   : > { %p630_p8 = por %p84_p6, %p83_p5  ;;  %p634_p9 = por %p111_p7, %p77_p1 }
  0x13   : > { %s63_s27 = ssub.s32 %s543_s17, %s783_s21  ;;  %p640_p12 = por %p117_p10, %p83_p5 }
  0x14   : > { %s764_s26 = scalar_select %p634_p9, 1, 0 }
  0x15   : > { %s65_s28 = sor.u32 %s64_s23, %s63_s27  ;;  %p353_p13 = scmp.lt.s32.totalorder %s547_s18, 4 }
  0x16   : > { %p68_p11 = scmp.eq.s32.totalorder %s65_s28, 0  ;;  %s140_s30 = sand.u32 1, %s527_s13  }
  0x17   : > { %s765_s29 = scalar_select %p640_p12, 1, 0 }
  0x18   : > { %s647_s3 = scalar_select %p68_p11, %s527_s13, %s70_s22  }
  0x19   : > { %s326_s4 = sshll.u32 %s140_s30, 2  ;;  %s327_s5 = sshll.u32 %s539_s16, 1 }
  0x1a   : > { %s328_s6 = sshll.u32 %s543_s17, 2  ;;  %s144_s7 = scalar_lea.vmem [#allocation3], %s326_s4 }
  0x1b   : > { %s156_s8 = sshll.u32 %s144_s7, 4  ;;  %s152_s9 = sadd.s32 %s328_s6, %s327_s5  ;;  %s651_s8 = int_to_ptr.vmem [resolvable:$true] %s156_s8 }
  0x1c   : > { %s329_s10 = sshll.u32 %s152_s9, 5  ;;  %p655_p0 = pnand %p353_p13, %p622_p3 }
  0x1d   : > { %s662_s22 = scalar_lea.hbm %s759_s1, %s329_s10  ;;  %s141_s27 = scalar_lea.sflag [#allocation4], %s140_s30 }
  0x1e   : > { %s419_s28 = scalar_lea.hbm %s662_s22, 64  ;;  %p421_p3 = pneg %p655_p0 }
  0x1f   : > { %p420_p4 = scmp.ne.s32.totalorder %s662_s22, %s419_s28  ;;  %s424_s5 = scalar_lea.hbm %s759_s1, 256 }
  0x20   : > { %p425_p7 = scmp.lt.u32.totalorder %s662_s22, %s759_s1  ;;  %p426_p10 = scmp.lt.u32.totalorder %s424_s5, %s419_s28 }
  0x21   : > { %p422_p5 = pnand %p421_p3, %p420_p4  ;;  %p428_p13 = scmp.lt.u32.totalorder %s419_s28, %s662_s22 }
  0x22   : > { %p427_p11 = por %p426_p10, %p425_p7 }
  0x23   : > { %p423_p6 = pneg %p422_p5 }
  0x24   : > { %p429_p1 = por %p428_p13, %p427_p11 }
  0x26   : > { %p430_p2 = pnand %p429_p1, %p423_p6 }
  0x28   : > { %433 = shalt.err (!%p430_p2)
}
  0x29   : > { %s434_s30 = scalar_lea.vmem %s651_s8, 64  ;;  %s549_s9 = smov [#allocation3]  }
  0x2a   : > { %p435_p4 = scmp.ne.s32.totalorder %s651_s8, %s434_s30  ;;  %s439_s10 = sshll.u32 %s549_s9, 4  ;;  %s440_s10 = int_to_ptr.vmem [resolvable:$false] %s439_s10 }
  0x2b   : > { %s441_s19 = scalar_lea.vmem %s440_s10, 128  ;;  %p442_p9 = scmp.lt.s32.totalorder %s651_s8, %s440_s10 }
  0x2c   : > { %p437_p5 = pnand %p435_p4, %p421_p3  ;;  %p443_p7 = scmp.lt.s32.totalorder %s441_s19, %s434_s30 }
  0x2e   : > { %p438_p12 = pneg %p437_p5  ;;  %p444_p10 = por %p443_p7, %p442_p9 }
  0x30   : > { %p445_p11 = pnand %p444_p10, %p438_p12 }
  0x32   : > { %448 = shalt.err (!%p445_p11)
}
  0x33   : > { %348 = dma.hbm_to_vmem [thread:$0]  (!%p655_p0), %s662_s22, 64, %s651_s8, %s141_s27  }
  0x34   : > { %p767_p1 = scmp.lt.s32.totalorder %s547_s18, 5  ;;  %p768_p2 = scmp.ge.s32.totalorder %s547_s18, 1 }
  0x36   : > { %p162_p3 = pnand %p768_p2, %p767_p1 }
  0x37   : > { %s696_s23 = sand.u32 (!%p162_p3), 1, %s523_s12  }
  0x38   : > { %165 = sbr.rel (%p162_p3) target bundleno = 111 (0x6f), region = 28  ;;  %s331_s28 = sshll.u32 (!%p162_p3), %s696_s23, 2 }
  0x39   : > { %s168_s24 = scalar_lea.sflag (!%p162_p3), [#allocation4], %s696_s23  ;;  %s171_s4 = scalar_lea.vmem (!%p162_p3), [#allocation3], %s331_s28 }
  0x3f   : > { %510 = dma.done.wait (%p630_p8), %s168_s24, 64  }
  0x40   : > { %512 = vsyncadd (%p630_p8), %s168_s24, 4294967232  ;;  %s191_s0 = scalar_lea.vmem [#allocation6], %s331_s28  ;;  %p333_p9 = scmp.ne.s32.totalorder %s531_s14, 0 }
  0x41   : > { %v198_v0 = vld [vmem:[%s171_s4] sm:$0xf] (!%p333_p9) }
  0x42   : > { %197 = sbr.rel (%p333_p9) target bundleno = 73 (0x49), region = 36  ;;  %199 = vst [vmem:[%s191_s0] sm:$0xf] (!%p333_p9), %v198_v0 }
  0x49 PF: > { %p334_p12 = scmp.ne.s32.totalorder %s531_s14, 1 }
  0x4a   : > { %s205_s8 = sld [smem:[#allocation2]] (!%p334_p12)  ;;  %v204_v1 = vld [vmem:[%s171_s4] sm:$0xf] (!%p334_p12) }
  0x4b   : > { %203 = sbr.rel (%p334_p12) target bundleno = 84 (0x54), region = 40 }
  0x50   : > { %v206_v2 = vstv (!%p334_p12), %s205_s8 }
  0x51   : > { %v207_v3 = vadd.f32 (!%p334_p12), %v206_v2, %v204_v1 }
  0x53   : > { %208 = vst [vmem:[%s191_s0] sm:$0xf] %v207_v3 }
  0x54 PF: > { %s336_s25 = sshll.u32 %s531_s14, 1  ;;  %s337_s22 = sshll.u32 %s535_s15, 2 }
  0x55   : > { %s228_s27 = sshll.u32 %s191_s0, 4  ;;  %s224_s5 = sadd.s32 %s337_s22, %s336_s25  ;;  %s708_s27 = int_to_ptr.vmem [resolvable:$true] %s228_s27 }
  0x56   : > { %s338_s6 = sshll.u32 %s224_s5, 5  ;;  %s210_s10 = scalar_lea.sflag [#allocation5], %s696_s23 }
  0x57   : > { %s226_s9 = scalar_lea.hbm %s760_s2, %s338_s6  ;;  %s449_s19 = scalar_lea.vmem %s708_s27, 64 }
  0x58   : > { %p450_p8 = scmp.ne.s32.totalorder %s708_s27, %s449_s19  ;;  %p769_p0 = scmp.ne.s32.totalorder %s764_s26, 0 }
  0x59   : > { %s550_s14 = smov [#allocation6]  }
  0x5a   : > { %p451_p6 = pnand %p450_p8, %p769_p0  ;;  %s453_s15 = sshll.u32 %s550_s14, 4  ;;  %s454_s15 = int_to_ptr.vmem [resolvable:$false] %s453_s15 }
  0x5b   : > { %s455_s28 = scalar_lea.vmem %s454_s15, 128  ;;  %p456_p4 = scmp.lt.s32.totalorder %s708_s27, %s454_s15 }
  0x5c   : > { %p452_p13 = pneg %p451_p6  ;;  %p457_p5 = scmp.lt.s32.totalorder %s455_s28, %s449_s19 }
  0x5e   : > { %p458_p7 = por %p457_p5, %p456_p4 }
  0x60   : > { %p459_p10 = pnand %p458_p7, %p452_p13 }
  0x62   : > { %462 = shalt.err (!%p459_p10)
}
  0x63   : > { %s463_s24 = scalar_lea.hbm %s226_s9, 64  ;;  %s467_s0 = scalar_lea.hbm %s760_s2, 256 }
  0x64   : > { %p464_p11 = scmp.ne.s32.totalorder %s226_s9, %s463_s24  ;;  %p468_p3 = scmp.lt.u32.totalorder %s226_s9, %s760_s2 }
  0x65   : > { %p469_p9 = scmp.lt.u32.totalorder %s467_s0, %s463_s24  ;;  %p471_p8 = scmp.lt.u32.totalorder %s463_s24, %s226_s9 }
  0x66   : > { %p465_p1 = pnand %p464_p11, %p769_p0 }
  0x67   : > { %p470_p12 = por %p469_p9, %p468_p3 }
  0x68   : > { %p466_p2 = pneg %p465_p1 }
  0x69   : > { %p472_p6 = por %p471_p8, %p470_p12 }
  0x6b   : > { %p473_p13 = pnand %p472_p6, %p466_p2 }
  0x6d   : > { %476 = shalt.err (!%p473_p13)
}
  0x6e   : > { %343 = dma.vmem_to_hbm [thread:$0]  (%p769_p0), %s708_s27, 64, %s226_s9, %s210_s10  }
  0x6f PF: > { %p354_p4 = scmp.ge.s32.totalorder %s547_s18, 2  ;;  %s240_s22 = sand.u32 1, %s519_s11  }
  0x70   : > { %p770_p5 = scmp.ne.s32.totalorder %s765_s29, 0  ;;  %s241_s5 = scalar_lea.sflag [#allocation5], %s240_s22 }
  0x72   : > { %p350_p7 = pnand %p354_p4, %p770_p5 }
  0x74   : > { %514 = dma.done.wait (!%p350_p7), %s241_s5, 64  }
  0x75   : > { %516 = vsyncadd (!%p350_p7), %s241_s5, 4294967232  ;;  %s19_s18 = sadd.s32 1, %s547_s18   ;;  %s771_s11 = smov %s523_s12 }
  0x76   : > { %p16_p10 = scmp.ge.s32.totalorder %s19_s18, 6   ;;  %s772_s12 = smov %s527_s13 }
  0x77   : > { %s773_s13 = smov %s647_s3  ;;  %s774_s14 = smov %s539_s16 }
  0x78   : > { %s775_s15 = smov %s543_s17  ;;  %s776_s16 = smov %s779_s20 }
  0x79   : > { %s777_s17 = smov %s783_s21  ;;  %18 = sbr.rel (!%p16_p10) target bundleno = 9 (0x9), region = 81 }
  0x80   :  { %246 = vsyncpa [#allocation4], 1 }
  0x81   :  { %248 = vsyncpa [#allocation4 + $0x1], 1 }
  0x82   :  { %249 = vsyncpa [#allocation5], 1 }
  0x83   :  { %251 = vsyncpa [#allocation5 + $0x1], 1 }

</bundles_post_ra>
